<compile_context>
chip_gen: v6e
topology: v6e:2x2x1
jax: 0.10.0
libtpu: 0.0.40
codegen_flags: <defaults>
</compile_context>

<pallas_src>
import jax
import jax.numpy as jnp
from jax.experimental import pallas as pl
from jax.experimental.pallas import tpu as pltpu

NEG_SLOPE = 0.01   # torch LeakyReLU default
BN_EPS = 1e-5      # torch BatchNorm2d default


# ------------------------------ fused kernel ------------------------------- #

def _leaky(x):
    return jnp.where(x >= 0, x, NEG_SLOPE * x)


def _make_fused_kernel(depth, filters, layer_meta):
    """layer_meta[l] = (KH_l, H_out_l, F_in_l) for l >= 1 (static ints)."""

    def kernel(*refs):
        # refs: x, w_toep, [w_l, b_l for l in 1..depth-1], scale_last, bias_last, out
        x = refs[0][...]                       # (Cin*C, Tb)
        w0 = refs[1][...]                      # (H0_out*F, Cin*C) block-Toeplitz
        tb = x.shape[-1]
        idx = 2

        # Layer 0: whole (kh,1)-conv as a single MXU matmul, rows h-major.
        y = jnp.dot(w0, x, preferred_element_type=jnp.float32)
        y = _leaky(y)                          # BN folded into next layer's w/b

        # Layers 1..depth-1 (previous BN already folded into w/b wrapper-side).
        for l in range(1, depth):
            w = refs[idx][...]                 # (F, KH*F_in), h-major columns
            b = refs[idx + 1][...]             # (F, 1)
            idx += 2
            kh, h_out, f_in = layer_meta[l]
            b_b = jnp.broadcast_to(b, (filters, tb))   # hoisted out of h loop
            rows = []
            for h in range(h_out):             # static, usually 1
                win = y[h * f_in:(h + kh) * f_in, :]   # contiguous sublane rows
                s = jnp.dot(w, win, preferred_element_type=jnp.float32) + b_b
                rows.append(_leaky(s))
            y = rows[0] if h_out == 1 else jnp.concatenate(rows, axis=0)

        # Final layer's eval-mode BatchNorm affine stays in-kernel.
        scale = refs[idx][...]                 # (F, 1)
        bias = refs[idx + 1][...]              # (F, 1)
        o_ref = refs[idx + 2]
        o_ref[...] = y * scale + bias          # lane-dense (F, Tb) store

    return kernel


# -------------------------- trace-time weight prep -------------------------- #

def _prepare_params(params, channels):
    """Fold BN affines forward and build matmul-ready weights (all wrapper-side)."""
    depth = len(params)

    affines = []
    for p in params:
        inv_std = 1.0 / jnp.sqrt(p["var"].astype(jnp.float32) + BN_EPS)
        scale = p["gamma"].astype(jnp.float32) * inv_std
        bias = p["beta"].astype(jnp.float32) - p["mean"].astype(jnp.float32) * scale
        affines.append((scale, bias))

    # ---- layer 0: block-Toeplitz weight over flattened (in_ch*channels) rows
    w0 = params[0]["w"].astype(jnp.float32)            # (F, Cin, KH0, 1)
    f0, cin0, kh0, _ = w0.shape
    h0_out = channels - kh0 + 1
    w0_3 = w0[..., 0]                                  # (F, Cin, KH0)
    wt = jnp.zeros((h0_out, f0, cin0, channels), jnp.float32)
    for h in range(h0_out):
        wt = wt.at[h, :, :, h:h + kh0].set(w0_3)
    w_toep = wt.reshape(h0_out * f0, cin0 * channels)  # rows: h-major, f-minor

    weights = [w_toep]
    layer_meta = [None] * depth
    h_prev, f_prev = h0_out, f0
    prev_scale, prev_bias = affines[0]

    # ---- layers 1..depth-1: fold previous BN into the conv
    for l in range(1, depth):
        w = params[l]["w"].astype(jnp.float32)[..., 0]  # (F, F_in, KH)
        f_, f_in, kh = w.shape
        h_out = h_prev - kh + 1
        layer_meta[l] = (kh, h_out, f_in)
        w_fold = w * prev_scale[None, :, None]
        b_fold = jnp.sum(w * prev_bias[None, :, None], axis=(1, 2)).reshape(f_, 1)
        # columns h-major (dh*F_in + cin) to match the intermediate's row order
        w_flat = jnp.transpose(w_fold, (0, 2, 1)).reshape(f_, kh * f_in)
        weights += [w_flat, b_fold]
        h_prev, f_prev = h_out, f_
        prev_scale, prev_bias = affines[l]

    assert h_prev == 1, "SpatialFilter kernel sizes must collapse height to 1"
    weights += [prev_scale.reshape(-1, 1), prev_bias.reshape(-1, 1)]
    return weights, layer_meta, f_prev


# ------------------------- SpatialFilter forward --------------------------- #

def spatial_filter_kernel_sizes(channels, depth):
    kernels = [channels // depth for _ in range(depth - 1)]
    kernels += [channels - sum(kernels) + depth - 1]
    return kernels


def spatial_filter_forward(x, params, *, batch_per_step=1):
    """x: (N, channels, T) or (N, in_ch, channels, T) -> (N, filters, T).

    batch_per_step=1  -> grid=(N,), "parallel": uses both TensorCores on v7x.
    batch_per_step=N  -> single grid step (batch folded into lanes): best on
                         the single-TC v5e/v6e chips.
    """
    if x.ndim < 4:
        x = x[:, None, :, :]                  # unsqueeze(1) -> (N, 1, C, T)
    n, cin, c, t = x.shape
    depth = len(params)

    weights, layer_meta, filters = _prepare_params(params, c)

    assert n % batch_per_step == 0
    tb = batch_per_step * t
    assert tb % 128 == 0 or batch_per_step == n, (
        "lane block must be a multiple of 128 or cover the full batch*time axis")

    # batch folded into the lane axis: row = cin*C + c, col = n*T + t
    x2d = jnp.transpose(x, (1, 2, 0, 3)).reshape(cin * c, n * t).astype(jnp.float32)

    kernel = _make_fused_kernel(depth, filters, layer_meta)

    in_specs = [pl.BlockSpec((cin * c, tb), lambda i: (0, i))]
    for arr in weights:
        in_specs.append(pl.BlockSpec(arr.shape, lambda i: (0, 0)))

    out2d = pl.pallas_call(
        kernel,
        out_shape=jax.ShapeDtypeStruct((filters, n * t), jnp.float32),
        grid=(n // batch_per_step,),
        in_specs=in_specs,
        out_specs=pl.BlockSpec((filters, tb), lambda i: (0, i)),
        compiler_params=pltpu.CompilerParams(
            dimension_semantics=("parallel",)),
    )(x2d, *weights)

    return jnp.transpose(out2d.reshape(filters, n, t), (1, 0, 2))


# ------------------------------ parameter gen ------------------------------ #

def make_spatial_filter_params(key, channels, filters, depth, in_ch=1):
    """Deterministic synthetic parameters (conv weights + eval BN stats)."""
    params = []
    in_f = in_ch
    for kh in spatial_filter_kernel_sizes(channels, depth):
        key, kw_, kg, kb, km, kv = jax.random.split(key, 6)
        w = 0.1 * jax.random.normal(kw_, (filters, in_f, kh, 1), jnp.float32)
        gamma = 1.0 + 0.1 * jax.random.normal(kg, (filters,), jnp.float32)
        beta = 0.1 * jax.random.normal(kb, (filters,), jnp.float32)
        mean = 0.1 * jax.random.normal(km, (filters,), jnp.float32)
        var = jnp.abs(jax.random.normal(kv, (filters,), jnp.float32)) + 0.5
        params.append(dict(w=w, gamma=gamma, beta=beta, mean=mean, var=var))
        in_f = filters
    return params


# ------------------------------ plain-JAX ref ------------------------------ #

def _conv_block_ref(x, w, gamma, beta, mean, var):
    _, _, kh, _ = w.shape
    h_out = x.shape[2] - kh + 1
    cols = []
    for h in range(h_out):
        win = x[:, :, h:h + kh, :]                             # (N, Cin, KH, T)
        cols.append(jnp.einsum('ncht,fch->nft', win, w[..., 0])[:, :, None, :])
    y = jnp.concatenate(cols, axis=2)
    y = jnp.where(y >= 0, y, NEG_SLOPE * y)
    scale = gamma / jnp.sqrt(var + BN_EPS)
    bias = beta - mean * scale
    return y * scale[None, :, None, None] + bias[None, :, None, None]


def _spatial_filter_ref(x, params):
    x = x[:, None, :, :]
    for p in params:
        x = _conv_block_ref(x, p["w"], p["gamma"], p["beta"], p["mean"], p["var"])
    return jnp.squeeze(x, axis=-2)


# ----------------------------------- main ---------------------------------- #

if __name__ == "__main__":
    key = jax.random.PRNGKey(0)

    N, CHANNELS, T = 2, 8, 128          # batch, EEG channels, time samples
    FILTERS, DEPTH = 8, 2               # -> kernel heights [4, 5], final height 1

    key, kx, kp = jax.random.split(key, 3)
    x = jax.random.normal(kx, (N, CHANNELS, T), jnp.float32)
    params = make_spatial_filter_params(kp, CHANNELS, FILTERS, DEPTH, in_ch=1)
    ref = _spatial_filter_ref(x, params)

    # parallel batch grid (v7x-friendly shape)
    out = jax.block_until_ready(spatial_filter_forward(x, params, batch_per_step=1))
    assert out.shape == (N, FILTERS, T), out.shape
    assert jnp.allclose(out, ref, atol=1e-4, rtol=1e-4), float(
        jnp.max(jnp.abs(out - ref)))

    # single grid step, batch folded into lanes (v5e/v6e-preferred shape)
    out1 = jax.block_until_ready(spatial_filter_forward(x, params, batch_per_step=N))
    assert jnp.allclose(out1, ref, atol=1e-4, rtol=1e-4), float(
        jnp.max(jnp.abs(out1 - ref)))

    # depth=3 exercises the generic intermediate-layer path of the fused kernel
    key, kp3 = jax.random.split(key)
    params3 = make_spatial_filter_params(kp3, CHANNELS, FILTERS, 3, in_ch=1)
    ref3 = _spatial_filter_ref(x, params3)
    out3 = jax.block_until_ready(spatial_filter_forward(x, params3, batch_per_step=N))
    assert jnp.allclose(out3, ref3, atol=1e-4, rtol=1e-4), float(
        jnp.max(jnp.abs(out3 - ref3)))

    print("KERNEL_OK")
</pallas_src>

<mosaic_0001>
module attributes {stable_mosaic.version = 11 : i64} {
  func.func @kernel(%arg0: i32, %arg1: memref<8x128xf32, #tpu.memory_space<vmem>>, %arg2: memref<40x8xf32, #tpu.memory_space<vmem>>, %arg3: memref<8x40xf32, #tpu.memory_space<vmem>>, %arg4: memref<8x1xf32, #tpu.memory_space<vmem>>, %arg5: memref<8x1xf32, #tpu.memory_space<vmem>>, %arg6: memref<8x1xf32, #tpu.memory_space<vmem>>, %arg7: memref<8x128xf32, #tpu.memory_space<vmem>>) attributes {dimension_semantics = [#tpu.dimension_semantics<parallel>], iteration_bounds = array<i64: 2>, scalar_prefetch = 0 : i64, scratch_operands = 0 : i64, tpu.core_type = #tpu.core_type<tc>, window_params = [{transform_indices = @transform_0, window_bounds = array<i64: 8, 128>}, {pipeline_mode = #tpu.pipeline_mode<synchronous>, transform_indices = @transform_1, window_bounds = array<i64: 40, 8>}, {pipeline_mode = #tpu.pipeline_mode<synchronous>, transform_indices = @transform_2, window_bounds = array<i64: 8, 40>}, {pipeline_mode = #tpu.pipeline_mode<synchronous>, transform_indices = @transform_3, window_bounds = array<i64: 8, 1>}, {pipeline_mode = #tpu.pipeline_mode<synchronous>, transform_indices = @transform_4, window_bounds = array<i64: 8, 1>}, {pipeline_mode = #tpu.pipeline_mode<synchronous>, transform_indices = @transform_5, window_bounds = array<i64: 8, 1>}, {transform_indices = @transform_6, window_bounds = array<i64: 8, 128>}]} {
    %c0 = arith.constant 0 : index
    %c0_0 = arith.constant 0 : index
    %0 = vector.load %arg1[%c0, %c0_0] : memref<8x128xf32, #tpu.memory_space<vmem>>, vector<8x128xf32>
    %c0_1 = arith.constant 0 : index
    %c0_2 = arith.constant 0 : index
    %1 = vector.load %arg2[%c0_1, %c0_2] : memref<40x8xf32, #tpu.memory_space<vmem>>, vector<40x8xf32>
    %cst = arith.constant dense<0.000000e+00> : vector<40x128xf32>
    %2 = tpu.matmul %1, %0, %cst {dimension_numbers = #tpu.dot_dimension_numbers<[1], [0], [0], [1], [0, 0, 1, 1], [], []>} : vector<40x8xf32>, vector<8x128xf32>, vector<40x128xf32> -> vector<40x128xf32>
    %cst_3 = arith.constant 0.000000e+00 : f32
    %3 = vector.broadcast %cst_3 : f32 to vector<40x128xf32>
    %4 = arith.cmpf oge, %2, %3 : vector<40x128xf32>
    %cst_4 = arith.constant 0.00999999977 : f32
    %5 = vector.broadcast %cst_4 : f32 to vector<40x128xf32>
    %6 = arith.mulf %5, %2 : vector<40x128xf32>
    %7 = arith.select %4, %2, %6 : vector<40x128xi1>, vector<40x128xf32>
    %c0_5 = arith.constant 0 : index
    %c0_6 = arith.constant 0 : index
    %8 = vector.load %arg3[%c0_5, %c0_6] : memref<8x40xf32, #tpu.memory_space<vmem>>, vector<8x40xf32>
    %c0_7 = arith.constant 0 : index
    %c0_8 = arith.constant 0 : index
    %9 = vector.load %arg4[%c0_7, %c0_8] : memref<8x1xf32, #tpu.memory_space<vmem>>, vector<8x1xf32>
    %10 = vector.shape_cast %9 : vector<8x1xf32> to vector<8x1xf32>
    %11 = vector.broadcast %10 : vector<8x1xf32> to vector<8x128xf32>
    %cst_9 = arith.constant dense<0.000000e+00> : vector<8x128xf32>
    %12 = tpu.matmul %8, %7, %cst_9 {dimension_numbers = #tpu.dot_dimension_numbers<[1], [0], [0], [1], [0, 0, 1, 1], [], []>} : vector<8x40xf32>, vector<40x128xf32>, vector<8x128xf32> -> vector<8x128xf32>
    %13 = arith.addf %12, %11 : vector<8x128xf32>
    %cst_10 = arith.constant 0.000000e+00 : f32
    %14 = vector.broadcast %cst_10 : f32 to vector<8x128xf32>
    %15 = arith.cmpf oge, %13, %14 : vector<8x128xf32>
    %cst_11 = arith.constant 0.00999999977 : f32
    %16 = vector.broadcast %cst_11 : f32 to vector<8x128xf32>
    %17 = arith.mulf %16, %13 : vector<8x128xf32>
    %18 = arith.select %15, %13, %17 : vector<8x128xi1>, vector<8x128xf32>
    %c0_12 = arith.constant 0 : index
    %c0_13 = arith.constant 0 : index
    %19 = vector.load %arg5[%c0_12, %c0_13] : memref<8x1xf32, #tpu.memory_space<vmem>>, vector<8x1xf32>
    %c0_14 = arith.constant 0 : index
    %c0_15 = arith.constant 0 : index
    %20 = vector.load %arg6[%c0_14, %c0_15] : memref<8x1xf32, #tpu.memory_space<vmem>>, vector<8x1xf32>
    %21 = vector.broadcast %19 : vector<8x1xf32> to vector<8x128xf32>
    %22 = arith.mulf %18, %21 : vector<8x128xf32>
    %23 = vector.broadcast %20 : vector<8x1xf32> to vector<8x128xf32>
    %24 = arith.addf %22, %23 : vector<8x128xf32>
    %c0_16 = arith.constant 0 : index
    %c0_17 = arith.constant 0 : index
    %25 = vector.load %arg7[%c0_16, %c0_17] : memref<8x128xf32, #tpu.memory_space<vmem>>, vector<8x128xf32>
    tpu.vector_store %arg7[%c0_16, %c0_17], %24 {strides = array<i32>} : memref<8x128xf32, #tpu.memory_space<vmem>>, vector<8x128xf32>,
    return
  }
  func.func @transform_0(%arg0: i32) -> (i32, i32) {
    %c0_i32 = arith.constant 0 : i32
    %c0_i32_0 = arith.constant 0 : i32
    return %c0_i32, %arg0 : i32, i32
  }
  func.func @transform_1(%arg0: i32) -> (i32, i32) {
    %c0_i32 = arith.constant 0 : i32
    %c0_i32_0 = arith.constant 0 : i32
    %c0_i32_1 = arith.constant 0 : i32
    return %c0_i32, %c0_i32_0 : i32, i32
  }
  func.func @transform_2(%arg0: i32) -> (i32, i32) {
    %c0_i32 = arith.constant 0 : i32
    %c0_i32_0 = arith.constant 0 : i32
    %c0_i32_1 = arith.constant 0 : i32
    return %c0_i32, %c0_i32_0 : i32, i32
  }
  func.func @transform_3(%arg0: i32) -> (i32, i32) {
    %c0_i32 = arith.constant 0 : i32
    %c0_i32_0 = arith.constant 0 : i32
    %c0_i32_1 = arith.constant 0 : i32
    return %c0_i32, %c0_i32_0 : i32, i32
  }
  func.func @transform_4(%arg0: i32) -> (i32, i32) {
    %c0_i32 = arith.constant 0 : i32
    %c0_i32_0 = arith.constant 0 : i32
    %c0_i32_1 = arith.constant 0 : i32
    return %c0_i32, %c0_i32_0 : i32, i32
  }
  func.func @transform_5(%arg0: i32) -> (i32, i32) {
    %c0_i32 = arith.constant 0 : i32
    %c0_i32_0 = arith.constant 0 : i32
    %c0_i32_1 = arith.constant 0 : i32
    return %c0_i32, %c0_i32_0 : i32, i32
  }
  func.func @transform_6(%arg0: i32) -> (i32, i32) {
    %c0_i32 = arith.constant 0 : i32
    %c0_i32_0 = arith.constant 0 : i32
    return %c0_i32, %arg0 : i32, i32
  }
}

</mosaic_0001>

<bundles_post_ra>
// kernel: tpu_custom_call.1
= control target key start
LH: loop header
LB: loop body
LE: loop exit
PB: predicated region body
PF: predicated region fallthrough
CT: control target
= control target key end

     0   :  { %11 = vsyncpa [#allocation3], 0  ;;  %s881_s0 = inlined_call_operand.vmem [shape: f32[8,256], index: 0, kind: input, shape index: {}]   ;;  %s882_s1 = inlined_call_operand.vmem [shape: f32[40,8], index: 1, kind: input, shape index: {}]   ;;  %s883_s2 = inlined_call_operand.vmem [shape: f32[8,40], index: 2, kind: input, shape index: {}]   ;;  %s884_s3 = inlined_call_operand.vmem [shape: f32[8,1], index: 3, kind: input, shape index: {}]   ;;  %s885_s4 = inlined_call_operand.vmem [shape: f32[8,1], index: 4, kind: input, shape index: {}]   ;;  %s886_s5 = inlined_call_operand.vmem [shape: f32[8,1], index: 5, kind: input, shape index: {}]   ;;  %s887_s6 = inlined_call_operand.hbm [shape: f32[8,256], index: 6, kind: output, shape index: {}]  }
   0x1   :  { %13 = vsyncpa [#allocation3 + $0x1], 0  ;;  %s749_s21 = smov 0   ;;  %s751_s22 = smov 0  }
   0x2   :  { %s753_s23 = smov 0   ;;  %s755_s24 = smov 0  }
   0x3 LB: > { %s770_s25 = sadd.s32 4294967295, %s708_s24   ;;  %s546_s26 = sadd.s32 4294967294, %s708_s24   ;;  %s708_s24 = sphi %s755_s24, %s893_s24   ;;  %s704_s23 = sphi %s753_s23, %s892_s23   ;;  %s700_s22 = sphi %s751_s22, %s891_s22   ;;  %s696_s21 = sphi %s749_s21, %s890_s21  }
   0x4   : > { %s774_s27 = sadd.s32 1, %s708_s24   ;;  %s157_s28 = sadd.s32 1, %s704_s23 }
   0x5   : > { %s154_s29 = ssub.s32 %s708_s24, %s774_s27  ;;  %p167_p0 = scmp.ne.s32.totalorder %s704_s23, %s700_s22 }
   0x6   : > { %p155_p1 = scmp.eq.s32.totalorder %s154_s29, 0  ;;  %p168_p2 = scmp.eq.s32.totalorder %s770_s25, 1 }
   0x7   : > { %p173_p3 = scmp.ne.s32.totalorder %s700_s22, %s696_s21  ;;  %p174_p4 = scmp.eq.s32.totalorder %s546_s26, 1 }
   0x8   : > { %s785_s30 = scalar_select %p155_p1, %s704_s23, %s157_s28  }
   0x9   : > { %p787_p5 = por %p168_p2, %p167_p0  ;;  %p791_p6 = por %p174_p4, %p173_p3 }
   0xa   : > { %p549_p7 = scmp.ge.s32.totalorder %s708_s24, 1  ;;  %p214_p8 = scmp.lt.s32.totalorder %s708_s24, 3 }
   0xc   : > { %p215_p9 = pnand %p549_p7, %p214_p8 }
   0xd   : > { %p243_p10 = scmp.lt.s32.totalorder (!%p215_p9), %s770_s25, 1  ;;  %s240_s17 = sand.u32 (!%p215_p9), 1, %s700_s22  }
   0xe   : > { %218 = sbr.rel (%p215_p9) target bundleno = 461 (0x1cd), region = 44  ;;  %s550_s18 = sshll.u32 (!%p215_p9), %s240_s17, 3 }
   0xf   : > { %s559_s19 = sshll.u32 (!%p215_p9), %s770_s25, 7  ;;  %s242_s20 = scalar_lea.vmem (!%p215_p9), [#allocation2], %s550_s18 }
  0x10   : > { %s487_s26 = sshll.u32 (!%p215_p9), %s242_s20, 4  ;;  %s713_s12 = smov (!%p215_p9), [#allocation2]   ;;  %s488_s26 = int_to_ptr.vmem [resolvable:$true] %s487_s26 }
  0x11   : > { %s648_s11 = scalar_lea.vmem (!%p215_p9), %s488_s26, 128 }
  0x12   : > { %p649_p11 = scmp.ne.s32.totalorder (!%p215_p9), %s488_s26, %s648_s11 }
  0x13   : > { %v710_v0 = vmov 0.0   ;;  %vm711_vm0 = vmmov 0   ;;  %s244_s9 = scalar_select %p243_p10, %s770_s25, 1  ;;  %v248_v1 = vld [vmem:[%s882_s1] sm:$0xff]  ;;  %vm253_vm1 = vcmask 64512   ;;  %v249_v3 = vld [vmem:[%s882_s1 + $0x8] sm:$0xff] }
  0x14   : > { %574 = vmatprep.subr.mxu0 %v710_v0  ;;  %576 = vmatprep.mubr.msk.f32.mxu0 %vm711_vm0, %v710_v0  ;;  %v250_v4 = vld [vmem:[%s882_s1 + $0x10] sm:$0xff]  ;;  %v251_v5 = vld [vmem:[%s882_s1 + $0x18] sm:$0xff]  ;;  %v252_v6 = vld [vmem:[%s882_s1 + $0x20] sm:$0xff]  ;;  %v712_v9 = vmov 0   ;;  %vm381_vm7 = vcmask 326656   ;;  %p650_p12 = pnand %p649_p11, %p787_p5 }
  0x15   : > { %591 = vmatprep.subr.mxu1 %v710_v0  ;;  %601 = vmatprep.mubr.msk.f32.mxu1 %vm711_vm0, %v710_v0  ;;  %s551_s10 = sshll.u32 %s244_s9, 3  ;;  %v375_v7 = vld [vmem:[%s884_s3] sm:$0xff]  ;;  %s485_s9 = scalar_lea.hbm %s887_s6, %s559_s19 }
  0x16   : > { %s246_s13 = scalar_lea.vmem %s881_s0, %s551_s10  ;;  %v459_v8 = vld [vmem:[%s886_s5] sm:$0xff]  ;;  %646 = vset.pattern.permute.xlu0 %v712_v9  ;;  %647 = vset.pattern.permute.xlu1 %v712_v9  ;;  %s474_s10 = scalar_lea.sflag [#allocation3], %s240_s17 }
  0x17   : > { %v247_v2 = vld [vmem:[%s246_s13] sm:$0xff]  ;;  %378 = vperm.xlu0 %646, %v375_v7   ;;  %468 = vperm.xlu1 %647, %v459_v8   ;;  %p651_p13 = pneg %p650_p12  ;;  %s652_s13 = sshll.u32 %s713_s12, 4  ;;  %s653_s13 = int_to_ptr.vmem [resolvable:$false] %s652_s13 }
  0x18   : > { %575 = vmatpush3.msra.mxu0 %v247_v2  ;;  %v458_v10 = vld [vmem:[%s885_s4] sm:$0xff]  ;;  %s654_s25 = scalar_lea.vmem %s653_s13, 256  ;;  %p655_p0 = scmp.lt.s32.totalorder %s488_s26, %s653_s13 }
  0x19   : > { %577 = vmatmul.mubr.msk.f32.vlgmr.msra.gmra.mxu0 %vm253_vm1, %v248_v1  ;;  %v374_v30 = vld [vmem:[%s883_s2] sm:$0xff]  ;;  %p656_p1 = scmp.lt.s32.totalorder %s654_s25, %s648_s11 }
  0x1a   : > { %579 = vmatprep.mubr.msk.f32.mxu0 %vm711_vm0, %v710_v0 }
  0x1b   : > { %462 = vperm.xlu0 %646, %v458_v10   ;;  %p657_p2 = por %p656_p1, %p655_p0 }
  0x1d   : > { %580 = vmatmul.mubr.msk.f32.gmra.mxu0 %vm253_vm1, %v249_v3  ;;  %p658_p3 = pnand %p657_p2, %p651_p13 }
  0x1e   : > { %582 = vmatprep.mubr.msk.f32.mxu0 %vm711_vm0, %v710_v0 }
  0x21   : > { %583 = vmatmul.mubr.msk.f32.gmra.mxu0 %vm253_vm1, %v250_v4 }
  0x22   : > { %585 = vmatprep.mubr.msk.f32.mxu0 %vm711_vm0, %v710_v0 }
  0x25   : > { %586 = vmatmul.mubr.msk.f32.gmra.mxu0 %vm253_vm1, %v251_v5 }
  0x26   : > { %588 = vmatprep.mubr.msk.f32.mxu0 %vm711_vm0, %v710_v0 }
  0x29   : > { %589 = vmatmul.mubr.msk.f32.gmra.mxu0 %vm253_vm1, %v252_v6 }
  0x92   : > { %v379_v32 = vpop.permute.xlu0 %378  ;;  %v469_v38 = vpop.permute.xlu1 %468 }
  0x96   : > { %v463_v37 = vpop.permute.xlu0 %462 }
  0xd9   : > { %v335_v11 = vpop.f32.mrf.mxu0 }
  0xda   : > { %v364_v27 = vmul.f32 0.01, %v335_v11  ;;  %vm359_vm6 = vcmp.ge.f32.partialorder %v335_v11, 0.0 }
  0xdb   : > { %v578_v12 = vpop.f32.mrf.mxu0 }
  0xdc   : > { %v369_v31 = vsel %vm359_vm6, %v335_v11, %v364_v27 }
  0xdd   : > { %v340_v13 = vpop.f32.mrf.mxu0 }
  0xde   : > { %v365_v25 = vmul.f32 0.01, %v340_v13  ;;  %vm360_vm5 = vcmp.ge.f32.partialorder %v340_v13, 0.0 }
  0xdf   : > { %v581_v14 = vpop.f32.mrf.mxu0 }
  0xe0   : > { %v370_v29 = vsel %vm360_vm5, %v340_v13, %v365_v25 }
  0xe1   : > { %v345_v15 = vpop.f32.mrf.mxu0 }
  0xe2   : > { %v366_v23 = vmul.f32 0.01, %v345_v15  ;;  %vm361_vm4 = vcmp.ge.f32.partialorder %v345_v15, 0.0 }
  0xe3   : > { %v584_v16 = vpop.f32.mrf.mxu0 }
  0xe4   : > { %v371_v28 = vsel %vm361_vm4, %v345_v15, %v366_v23 }
  0xe5   : > { %v350_v17 = vpop.f32.mrf.mxu0 }
  0xe6   : > { %v367_v20 = vmul.f32 0.01, %v350_v17  ;;  %vm362_vm3 = vcmp.ge.f32.partialorder %v350_v17, 0.0 }
  0xe7   : > { %v587_v18 = vpop.f32.mrf.mxu0 }
  0xe8   : > { %v372_v26 = vsel %vm362_vm3, %v350_v17, %v367_v20 }
  0xe9   : > { %v355_v19 = vpop.f32.mrf.mxu0 }
  0xea   : > { %v368_v21 = vmul.f32 0.01, %v355_v19  ;;  %vm363_vm2 = vcmp.ge.f32.partialorder %v355_v19, 0.0 }
  0xeb   : > { %v590_v22 = vpop.f32.mrf.mxu0 }
  0xec   : > { %v373_v24 = vsel %vm363_vm2, %v355_v19, %v368_v21 }
  0xed   : > { %592 = vmatpush3.msra.mxu1 %v373_v24 }
  0xee   : > { %593 = vmatprep.subr.mxu1 %v710_v0 }
  0xef   : > { %594 = vmatpush3.msra.mxu1 %v372_v26 }
  0xf0   : > { %595 = vmatprep.subr.mxu1 %v710_v0 }
  0xf1   : > { %596 = vmatpush3.msra.mxu1 %v371_v28 }
  0xf2   : > { %597 = vmatprep.subr.mxu1 %v710_v0 }
  0xf3   : > { %598 = vmatpush3.msra.mxu1 %v370_v29 }
  0xf4   : > { %599 = vmatprep.subr.mxu1 %v710_v0 }
  0xf5   : > { %600 = vmatpush3.msra.mxu1 %v369_v31 }
  0xf6   : > { %602 = vmatmul.mubr.msk.f32.vlgmr.msra.gmra.mxu1 %vm381_vm7, %v374_v30 }
 0x1b6   : > { %v451_v33 = vpop.f32.mrf.mxu1 }
 0x1b7   : > { %v452_v34 = vadd.f32 %v451_v33, %v379_v32 }
 0x1b8   : > { %v603_v35 = vpop.f32.mrf.mxu1 }
 0x1b9   : > { %vm455_vm8 = vcmp.ge.f32.partialorder %v452_v34, 0.0  ;;  %v456_v36 = vmul.f32 0.01, %v452_v34 }
 0x1bb   : > { %v457_v39 = vsel %vm455_vm8, %v452_v34, %v456_v36 }
 0x1bc   : > { %v465_v40 = vmul.f32 %v463_v37, %v457_v39 }
 0x1be   : > { %v471_v41 = vadd.f32 %v469_v38, %v465_v40 }
 0x1c0   : > { %472 = vst [vmem:[%s242_s20] sm:$0xff] %v471_v41 }
 0x1c1   : > { %661 = shalt.err (!%p658_p3)
}
 0x1c2   : > { %s662_s14 = scalar_lea.hbm %s485_s9, 128  ;;  %s666_s17 = scalar_lea.hbm %s887_s6, 256 }
 0x1c3   : > { %p663_p4 = scmp.ne.s32.totalorder %s485_s9, %s662_s14  ;;  %p667_p9 = scmp.lt.s32.totalorder %s485_s9, %s887_s6 }
 0x1c4   : > { %p668_p10 = scmp.lt.s32.totalorder %s666_s17, %s662_s14 }
 0x1c5   : > { %p664_p7 = pnand %p663_p4, %p787_p5 }
 0x1c6   : > { %p669_p11 = por %p668_p10, %p667_p9 }
 0x1c7   : > { %p665_p8 = pneg %p664_p7 }
 0x1c9   : > { %p670_p12 = pnand %p669_p11, %p665_p8 }
 0x1cb   : > { %673 = shalt.err (!%p670_p12)
}
 0x1cc   : > { %604 = dma.vmem_to_hbm [thread:$0]  (%p787_p5), %s488_s26, 128, %s485_s9, %s474_s10  }
 0x1cd PF: > { %p610_p13 = scmp.ge.s32.totalorder %s708_s24, 2  ;;  %s499_s20 = sand.u32 1, %s696_s21  }
 0x1ce   : > { %s500_s28 = scalar_lea.sflag [#allocation3], %s499_s20 }
 0x1cf   : > { %p607_p0 = pnand %p610_p13, %p791_p6 }
 0x1d1   : > { %p608_p1 = pneg %p607_p0 }
 0x1d3   : > { %691 = dma.done.wait (%p608_p1), %s500_s28, 128  }
 0x1d4   : > { %693 = vsyncadd (%p608_p1), %s500_s28, 4294967168  ;;  %p16_p2 = scmp.ge.s32.totalorder %s774_s27, 4   ;;  %s890_s21 = smov %s700_s22 }
 0x1d5   : > { %s891_s22 = smov %s704_s23  ;;  %s892_s23 = smov %s785_s30 }
 0x1d6   : > { %s893_s24 = smov %s774_s27  ;;  %18 = sbr.rel (!%p16_p2) target bundleno = 3 (0x3), region = 79 }
 0x1db   :  { %505 = vsyncpa [#allocation3], 1 }
 0x1dc   :  { %507 = vsyncpa [#allocation3 + $0x1], 1 }

</bundles_post_ra>
